<compile_context>
chip_gen: v5e
topology: v5e:2x2
jax: 0.10.0
libtpu: 0.0.40
codegen_flags: <defaults>
</compile_context>

<pallas_src>
import jax
import jax.numpy as jnp
from jax import lax
from jax.experimental import pallas as pl
from jax.experimental.pallas import tpu as pltpu

# Logical and lane-aligned (padded) layer sizes.
H1, H2, OUT = 400, 206, 2
H1_PAD, H2_PAD, OUT_PAD = 512, 256, 128

_INV_SQRT2 = 0.7071067811865476


def _gelu_exact(x):
    # PyTorch nn.GELU() default: 0.5 * x * (1 + erf(x / sqrt(2)))
    return 0.5 * x * (1.0 + lax.erf(x * jnp.float32(_INV_SQRT2)))


def fc_big_kernel(x_ref, w1_ref, b1_ref, w2_ref, b2_ref, w3_ref, b3_ref, o_ref):
    mdt = w1_ref.dtype                       # matmul-operand dtype (f32 / bf16)
    x = x_ref[...].astype(mdt)                                       # [TB, D]
    # fc1 + GELU  (padded hidden cols stay exactly 0: GELU(0 + 0) == 0)
    h1 = jnp.dot(x, w1_ref[...], preferred_element_type=jnp.float32) + b1_ref[...]
    h1 = _gelu_exact(h1)                                             # [TB, 512]
    # fc2 + GELU
    h2 = jnp.dot(h1.astype(mdt), w2_ref[...],
                 preferred_element_type=jnp.float32) + b2_ref[...]
    h2 = _gelu_exact(h2)                                             # [TB, 256]
    # fc3 -> lane-dense padded output slab (cols 2..127 are zeros)
    out = jnp.dot(h2.astype(mdt), w3_ref[...],
                  preferred_element_type=jnp.float32) + b3_ref[...]
    o_ref[...] = out.astype(o_ref.dtype)                             # [TB, 128]


def _round_up(n, m):
    return ((n + m - 1) // m) * m


def _pad2(a, rows, cols):
    r, c = a.shape
    return jnp.pad(a, ((0, rows - r), (0, cols - c)))


def fc_big_model(x, params, *, tb=512, use_bf16=False):
    """Forward pass of FC_big_model via one batch-tiled Pallas kernel.

    Args:
      x: [batch, input_dim] float32
      params: dict with w1 [D,400], b1 [1,400], w2 [400,206], b2 [1,206],
              w3 [206,2], b3 [1,2]  (PyTorch nn.Linear weights, transposed).
      tb: target batch-tile size (rows per grid step).
      use_bf16: cast matmul operands to bf16 (faster on v6e/v7x, looser numerics).
    Returns:
      [batch, 2] float32
    """
    B, D = x.shape
    w_dtype = jnp.bfloat16 if use_bf16 else jnp.float32

    # Zero-pad parameters once to lane-aligned shapes (exact; see header).
    w1 = _pad2(params["w1"], D, H1_PAD).astype(w_dtype)
    b1 = _pad2(params["b1"], 1, H1_PAD)
    w2 = _pad2(params["w2"], H1_PAD, H2_PAD).astype(w_dtype)
    b2 = _pad2(params["b2"], 1, H2_PAD)
    w3 = _pad2(params["w3"], H2_PAD, OUT_PAD).astype(w_dtype)
    b3 = _pad2(params["b3"], 1, OUT_PAD)

    # Batch tile: multiple of 8 (f32 sublane), capped for v7x VMEM headroom.
    TB = _round_up(min(tb, _round_up(B, 8)), 8)
    B_pad = _round_up(B, TB)
    x_pad = jnp.pad(x, ((0, B_pad - B), (0, 0)))

    grid = (B_pad // TB,)
    resident = lambda shape: pl.BlockSpec(shape, lambda i: (0, 0))

    out = pl.pallas_call(
        fc_big_kernel,
        out_shape=jax.ShapeDtypeStruct((B_pad, OUT_PAD), jnp.float32),
        grid_spec=pltpu.PrefetchScalarGridSpec(
            num_scalar_prefetch=0,
            grid=grid,
            in_specs=[
                pl.BlockSpec((TB, D), lambda i: (i, 0)),   # x: tiled over batch
                resident((D, H1_PAD)),                     # weights / biases
                resident((1, H1_PAD)),                     #   stay VMEM-resident
                resident((H1_PAD, H2_PAD)),
                resident((1, H2_PAD)),
                resident((H2_PAD, OUT_PAD)),
                resident((1, OUT_PAD)),
            ],
            out_specs=pl.BlockSpec((TB, OUT_PAD), lambda i: (i, 0)),
        ),
        compiler_params=pltpu.CompilerParams(
            dimension_semantics=("parallel",)),
    )(x_pad, w1, b1, w2, b2, w3, b3)

    return out[:B, :OUT]


def init_params(key, input_dim):
    """Deterministic synthetic parameters (PyTorch-Linear-like uniform init)."""
    ks = jax.random.split(key, 6)

    def linear(kw, kb, fan_in, fan_out):
        bound = 1.0 / jnp.sqrt(jnp.float32(fan_in))
        w = jax.random.uniform(kw, (fan_in, fan_out), jnp.float32, -bound, bound)
        b = jax.random.uniform(kb, (1, fan_out), jnp.float32, -bound, bound)
        return w, b

    w1, b1 = linear(ks[0], ks[1], input_dim, H1)
    w2, b2 = linear(ks[2], ks[3], H1, H2)
    w3, b3 = linear(ks[4], ks[5], H2, OUT)
    return dict(w1=w1, b1=b1, w2=w2, b2=b2, w3=w3, b3=b3)


def reference_forward(x, p):
    h1 = _gelu_exact(x @ p["w1"] + p["b1"])
    h2 = _gelu_exact(h1 @ p["w2"] + p["b2"])
    return h2 @ p["w3"] + p["b3"]


if __name__ == "__main__":
    key = jax.random.PRNGKey(0)
    k_x, k_p, k_x2 = jax.random.split(key, 3)

    batch, input_dim = 8, 32          # input_dim = number of time lags / seq len
    x = jax.random.normal(k_x, (batch, input_dim), jnp.float32)
    params = init_params(k_p, input_dim)

    # Single-tile case (B=8).
    out = jax.block_until_ready(fc_big_model(x, params))
    ref = reference_forward(x, params)
    assert out.shape == (batch, OUT)
    assert jnp.allclose(out, ref, atol=1e-4, rtol=1e-4), "mismatch vs pure-JAX reference"

    # Multi-tile case (exercises the batch grid, partial-tile padding + slice).
    batch2 = 600
    x2 = jax.random.normal(k_x2, (batch2, input_dim), jnp.float32)
    out2 = jax.block_until_ready(fc_big_model(x2, params))
    ref2 = reference_forward(x2, params)
    assert out2.shape == (batch2, OUT)
    assert jnp.allclose(out2, ref2, atol=1e-4, rtol=1e-4), "mismatch (tiled batch)"

    print("KERNEL_OK")
</pallas_src>

<mosaic_0001>
module attributes {stable_mosaic.version = 11 : i64} {
  func.func @fc_big_kernel(%arg0: i32, %arg1: memref<8x32xf32, #tpu.memory_space<vmem>>, %arg2: memref<32x512xf32, #tpu.memory_space<vmem>>, %arg3: memref<1x512xf32, #tpu.memory_space<vmem>>, %arg4: memref<512x256xf32, #tpu.memory_space<vmem>>, %arg5: memref<1x256xf32, #tpu.memory_space<vmem>>, %arg6: memref<256x128xf32, #tpu.memory_space<vmem>>, %arg7: memref<1x128xf32, #tpu.memory_space<vmem>>, %arg8: memref<8x128xf32, #tpu.memory_space<vmem>>) attributes {dimension_semantics = [#tpu.dimension_semantics<parallel>], iteration_bounds = array<i64: 1>, scalar_prefetch = 0 : i64, scratch_operands = 0 : i64, tpu.core_type = #tpu.core_type<tc>, window_params = [{transform_indices = @transform_0, window_bounds = array<i64: 8, 32>}, {pipeline_mode = #tpu.pipeline_mode<synchronous>, transform_indices = @transform_1, window_bounds = array<i64: 32, 512>}, {pipeline_mode = #tpu.pipeline_mode<synchronous>, transform_indices = @transform_2, window_bounds = array<i64: 1, 512>}, {pipeline_mode = #tpu.pipeline_mode<synchronous>, transform_indices = @transform_3, window_bounds = array<i64: 512, 256>}, {pipeline_mode = #tpu.pipeline_mode<synchronous>, transform_indices = @transform_4, window_bounds = array<i64: 1, 256>}, {pipeline_mode = #tpu.pipeline_mode<synchronous>, transform_indices = @transform_5, window_bounds = array<i64: 256, 128>}, {pipeline_mode = #tpu.pipeline_mode<synchronous>, transform_indices = @transform_6, window_bounds = array<i64: 1, 128>}, {transform_indices = @transform_7, window_bounds = array<i64: 8, 128>}]} {
    %c0 = arith.constant 0 : index
    %c0_0 = arith.constant 0 : index
    %0 = vector.load %arg1[%c0, %c0_0] : memref<8x32xf32, #tpu.memory_space<vmem>>, vector<8x32xf32>
    %c0_1 = arith.constant 0 : index
    %c0_2 = arith.constant 0 : index
    %1 = vector.load %arg2[%c0_1, %c0_2] : memref<32x512xf32, #tpu.memory_space<vmem>>, vector<32x512xf32>
    %cst = arith.constant dense<0.000000e+00> : vector<8x512xf32>
    %2 = tpu.matmul %0, %1, %cst {dimension_numbers = #tpu.dot_dimension_numbers<[1], [0], [0], [1], [0, 0, 1, 1], [], []>} : vector<8x32xf32>, vector<32x512xf32>, vector<8x512xf32> -> vector<8x512xf32>
    %c0_3 = arith.constant 0 : index
    %c0_4 = arith.constant 0 : index
    %3 = vector.load %arg3[%c0_3, %c0_4] : memref<1x512xf32, #tpu.memory_space<vmem>>, vector<1x512xf32>
    %4 = vector.broadcast %3 : vector<1x512xf32> to vector<8x512xf32>
    %5 = arith.addf %2, %4 : vector<8x512xf32>
    %cst_5 = arith.constant 5.000000e-01 : f32
    %6 = vector.broadcast %cst_5 : f32 to vector<8x512xf32>
    %7 = arith.mulf %6, %5 : vector<8x512xf32>
    %cst_6 = arith.constant 0.707106769 : f32
    %8 = vector.broadcast %cst_6 : f32 to vector<8x512xf32>
    %9 = arith.mulf %5, %8 : vector<8x512xf32>
    %10 = math.erf %9 : vector<8x512xf32>
    %cst_7 = arith.constant 1.000000e+00 : f32
    %11 = vector.broadcast %cst_7 : f32 to vector<8x512xf32>
    %12 = arith.addf %11, %10 : vector<8x512xf32>
    %13 = arith.mulf %7, %12 : vector<8x512xf32>
    %c0_8 = arith.constant 0 : index
    %c0_9 = arith.constant 0 : index
    %14 = vector.load %arg4[%c0_8, %c0_9] : memref<512x256xf32, #tpu.memory_space<vmem>>, vector<512x256xf32>
    %cst_10 = arith.constant dense<0.000000e+00> : vector<8x256xf32>
    %15 = tpu.matmul %13, %14, %cst_10 {dimension_numbers = #tpu.dot_dimension_numbers<[1], [0], [0], [1], [0, 0, 1, 1], [], []>} : vector<8x512xf32>, vector<512x256xf32>, vector<8x256xf32> -> vector<8x256xf32>
    %c0_11 = arith.constant 0 : index
    %c0_12 = arith.constant 0 : index
    %16 = vector.load %arg5[%c0_11, %c0_12] : memref<1x256xf32, #tpu.memory_space<vmem>>, vector<1x256xf32>
    %17 = vector.broadcast %16 : vector<1x256xf32> to vector<8x256xf32>
    %18 = arith.addf %15, %17 : vector<8x256xf32>
    %cst_13 = arith.constant 5.000000e-01 : f32
    %19 = vector.broadcast %cst_13 : f32 to vector<8x256xf32>
    %20 = arith.mulf %19, %18 : vector<8x256xf32>
    %cst_14 = arith.constant 0.707106769 : f32
    %21 = vector.broadcast %cst_14 : f32 to vector<8x256xf32>
    %22 = arith.mulf %18, %21 : vector<8x256xf32>
    %23 = math.erf %22 : vector<8x256xf32>
    %cst_15 = arith.constant 1.000000e+00 : f32
    %24 = vector.broadcast %cst_15 : f32 to vector<8x256xf32>
    %25 = arith.addf %24, %23 : vector<8x256xf32>
    %26 = arith.mulf %20, %25 : vector<8x256xf32>
    %c0_16 = arith.constant 0 : index
    %c0_17 = arith.constant 0 : index
    %27 = vector.load %arg6[%c0_16, %c0_17] : memref<256x128xf32, #tpu.memory_space<vmem>>, vector<256x128xf32>
    %cst_18 = arith.constant dense<0.000000e+00> : vector<8x128xf32>
    %28 = tpu.matmul %26, %27, %cst_18 {dimension_numbers = #tpu.dot_dimension_numbers<[1], [0], [0], [1], [0, 0, 1, 1], [], []>} : vector<8x256xf32>, vector<256x128xf32>, vector<8x128xf32> -> vector<8x128xf32>
    %c0_19 = arith.constant 0 : index
    %c0_20 = arith.constant 0 : index
    %29 = vector.load %arg7[%c0_19, %c0_20] : memref<1x128xf32, #tpu.memory_space<vmem>>, vector<1x128xf32>
    %30 = vector.broadcast %29 : vector<1x128xf32> to vector<8x128xf32>
    %31 = arith.addf %28, %30 : vector<8x128xf32>
    %c0_21 = arith.constant 0 : index
    %c0_22 = arith.constant 0 : index
    %32 = vector.load %arg8[%c0_21, %c0_22] : memref<8x128xf32, #tpu.memory_space<vmem>>, vector<8x128xf32>
    tpu.vector_store %arg8[%c0_21, %c0_22], %31 {strides = array<i32>} : memref<8x128xf32, #tpu.memory_space<vmem>>, vector<8x128xf32>,
    return
  }
  func.func @transform_0(%arg0: i32) -> (i32, i32) {
    %c0_i32 = arith.constant 0 : i32
    %c0_i32_0 = arith.constant 0 : i32
    return %arg0, %c0_i32 : i32, i32
  }
  func.func @transform_1(%arg0: i32) -> (i32, i32) {
    %c0_i32 = arith.constant 0 : i32
    %c0_i32_0 = arith.constant 0 : i32
    %c0_i32_1 = arith.constant 0 : i32
    return %c0_i32, %c0_i32_0 : i32, i32
  }
  func.func @transform_2(%arg0: i32) -> (i32, i32) {
    %c0_i32 = arith.constant 0 : i32
    %c0_i32_0 = arith.constant 0 : i32
    %c0_i32_1 = arith.constant 0 : i32
    return %c0_i32, %c0_i32_0 : i32, i32
  }
  func.func @transform_3(%arg0: i32) -> (i32, i32) {
    %c0_i32 = arith.constant 0 : i32
    %c0_i32_0 = arith.constant 0 : i32
    %c0_i32_1 = arith.constant 0 : i32
    return %c0_i32, %c0_i32_0 : i32, i32
  }
  func.func @transform_4(%arg0: i32) -> (i32, i32) {
    %c0_i32 = arith.constant 0 : i32
    %c0_i32_0 = arith.constant 0 : i32
    %c0_i32_1 = arith.constant 0 : i32
    return %c0_i32, %c0_i32_0 : i32, i32
  }
  func.func @transform_5(%arg0: i32) -> (i32, i32) {
    %c0_i32 = arith.constant 0 : i32
    %c0_i32_0 = arith.constant 0 : i32
    %c0_i32_1 = arith.constant 0 : i32
    return %c0_i32, %c0_i32_0 : i32, i32
  }
  func.func @transform_6(%arg0: i32) -> (i32, i32) {
    %c0_i32 = arith.constant 0 : i32
    %c0_i32_0 = arith.constant 0 : i32
    %c0_i32_1 = arith.constant 0 : i32
    return %c0_i32, %c0_i32_0 : i32, i32
  }
  func.func @transform_7(%arg0: i32) -> (i32, i32) {
    %c0_i32 = arith.constant 0 : i32
    %c0_i32_0 = arith.constant 0 : i32
    return %arg0, %c0_i32 : i32, i32
  }
}

</mosaic_0001>

<bundles_post_ra>
// kernel: tpu_custom_call.1
= control target key start
LH: loop header
LB: loop body
LE: loop exit
PB: predicated region body
PF: predicated region fallthrough
CT: control target
= control target key end

     0   :  { %12 = vsyncpa [#allocation3], 0  ;;  %s1334_s0 = inlined_call_operand.hbm [shape: f32[8,32], index: 0, kind: input, shape index: {}]   ;;  %s1335_s1 = inlined_call_operand.hbm [shape: f32[32,512], index: 1, kind: input, shape index: {}]   ;;  %s1336_s2 = inlined_call_operand.hbm [shape: f32[1,512], index: 2, kind: input, shape index: {}]   ;;  %s1337_s3 = inlined_call_operand.hbm [shape: f32[512,256], index: 3, kind: input, shape index: {}]   ;;  %s1338_s4 = inlined_call_operand.vmem [shape: f32[1,256], index: 4, kind: input, shape index: {}]   ;;  %s1339_s5 = inlined_call_operand.hbm [shape: f32[256,128], index: 5, kind: input, shape index: {}]   ;;  %s1340_s6 = inlined_call_operand.vmem [shape: f32[1,128], index: 6, kind: input, shape index: {}]   ;;  %s1341_s7 = inlined_call_operand.hbm [shape: f32[8,128], index: 7, kind: output, shape index: {}]  }
   0x1   :  { %13 = vsyncpa [#allocation6], 0 }
   0x2   :  { %14 = vsyncpa [#allocation9], 0  ;;  %s31_s26 = sshll.u32 %s1335_s1, 4  ;;  %s32_s26 = int_to_ptr.hbm [resolvable:$true] %s31_s26 }
   0x3   :  { %15 = vsyncpa [#allocation4], 0  ;;  %s1053_s27 = smov [#allocation5]   ;;  %s55_s8 = sshll.u32 %s1337_s3, 4  ;;  %s56_s8 = int_to_ptr.hbm [resolvable:$true] %s55_s8 }
   0x4   :  { %s33_s28 = sshll.u32 %s1053_s27, 4  ;;  %s1054_s9 = smov 512   ;;  %s34_s28 = int_to_ptr.vmem [resolvable:$true] %s33_s28 }
   0x5   :  { %s1055_s10 = smov 32   ;;  %s1056_s11 = smov [#allocation8]  }
   0x6   :  { %39 = dma.hbm_to_vmem [thread:$0]  %s32_s26, 2048, %s34_s28, [#allocation6], %s1054_s9, %s1054_s9, %s1055_s10  }
   0x7   :  { %s57_s12 = sshll.u32 %s1056_s11, 4  ;;  %s1057_s13 = smov 256   ;;  %s58_s12 = int_to_ptr.vmem [resolvable:$true] %s57_s12 }
   0x8   :  { %s1058_s14 = smov 16   ;;  %s21_s16 = sshll.u32 %s1334_s0, 4  ;;  %s22_s16 = int_to_ptr.hbm [resolvable:$true] %s21_s16 }
   0x9   :  { %63 = dma.hbm_to_vmem [thread:$0]  %s56_s8, 16384, %s58_s12, [#allocation9], %s1057_s13, %s1057_s13, %s1058_s14  }
   0xa   :  { %s1059_s17 = smov [#allocation2]   ;;  %s45_s20 = sshll.u32 %s1336_s2, 4  ;;  %s46_s20 = int_to_ptr.hbm [resolvable:$true] %s45_s20 }
   0xb   :  { %s23_s18 = sshll.u32 %s1059_s17, 4  ;;  %s1060_s21 = smov [#allocation7]   ;;  %s24_s18 = int_to_ptr.vmem [resolvable:$true] %s23_s18 }
   0xc   :  { %26 = dma.hbm_to_vmem [thread:$0]  %s22_s16, 128, %s24_s18, [#allocation3]  }
   0xd   :  { %s47_s22 = sshll.u32 %s1060_s21, 4  ;;  %s70_s25 = sshll.u32 %s1339_s5, 4  ;;  %s48_s22 = int_to_ptr.vmem [resolvable:$true] %s47_s22  ;;  %s71_s25 = int_to_ptr.hbm [resolvable:$true] %s70_s25 }
   0xe   :  { %50 = dma.hbm_to_vmem [thread:$0]  %s46_s20, 64, %s48_s22, [#allocation6]  }
   0xf   :  { %s1061_s0 = smov [#allocation10]   ;;  %s1062_s27 = smov 128  }
  0x10   :  { %s72_s26 = sshll.u32 %s1061_s0, 4  ;;  %s1063_s28 = smov 8   ;;  %s73_s26 = int_to_ptr.vmem [resolvable:$true] %s72_s26 }
  0x11   :  { %78 = dma.hbm_to_vmem [thread:$0]  %s71_s25, 4096, %s73_s26, [#allocation9], %s1062_s27, %s1062_s27, %s1063_s28  }
  0x12   :  { %1045 = dma.done.wait [#allocation3], 128  }
  0x13   :  { %1046 = vsyncadd [#allocation3], 4294967168 }
  0x14   :  { %1047 = dma.done.wait [#allocation6], 2112  }
  0x15   :  { %1048 = vsyncadd [#allocation6], 4294965184 }
  0x16   :  { %1049 = dma.done.wait [#allocation9], 20480  }
  0x17   :  { %1050 = vsyncadd [#allocation9], 4294946816  ;;  %v114_v0 = vld [vmem:[#allocation5 + $0x60] sm:$0xff]  ;;  %v115_v1 = vld [vmem:[#allocation5 + $0x68] sm:$0xff]  ;;  %vm128_vm0 = vcmask 261120   ;;  %s1064_s30 = smov [#allocation11]  }
  0x18   :  { %v110_v2 = vld [vmem:[#allocation5 + $0x40] sm:$0xff]  ;;  %144 = vmatpush.msra.mxu2 %v114_v0  ;;  %164 = vmatpush.msra.mxu3 %v115_v1  ;;  %v111_v3 = vld [vmem:[#allocation5 + $0x48] sm:$0xff]  ;;  %v101_v8 = vld [vmem:[#allocation2] sm:$0xff]  ;;  %s852_s8 = sshll.u32 %s1064_s30, 4  ;;  %s854_s11 = sshll.u32 %s1341_s7, 4  ;;  %s853_s8 = int_to_ptr.vmem [resolvable:$true] %s852_s8  ;;  %s855_s11 = int_to_ptr.hbm [resolvable:$true] %s854_s11 }
  0x19   :  { %v106_v4 = vld [vmem:[#allocation5 + $0x20] sm:$0xff]  ;;  %v107_v5 = vld [vmem:[#allocation5 + $0x28] sm:$0xff]  ;;  %v116_v9 = vld [vmem:[#allocation5 + $0x70] sm:$0xff] }
  0x1a   :  { %145 = vmatpush.msra.mxu2 %v110_v2  ;;  %165 = vmatpush.msra.mxu3 %v111_v3  ;;  %v102_v6 = vld [vmem:[#allocation5] sm:$0xff]  ;;  %v103_v7 = vld [vmem:[#allocation5 + $0x8] sm:$0xff]  ;;  %v117_v10 = vld [vmem:[#allocation5 + $0x78] sm:$0xff] }
  0x1b   :  { %v112_v11 = vld [vmem:[#allocation5 + $0x50] sm:$0xff]  ;;  %v113_v12 = vld [vmem:[#allocation5 + $0x58] sm:$0xff]  ;;  %v416_v19 = vld [vmem:[#allocation8 + $0xe0] sm:$0xff] }
  0x1c   :  { %146 = vmatpush.msra.mxu2 %v106_v4  ;;  %166 = vmatpush.msra.mxu3 %v107_v5  ;;  %v108_v13 = vld [vmem:[#allocation5 + $0x30] sm:$0xff]  ;;  %v109_v14 = vld [vmem:[#allocation5 + $0x38] sm:$0xff]  ;;  %v448_v20 = vld [vmem:[#allocation8 + $0x1e0] sm:$0xff] }
  0x1d   :  { %v104_v15 = vld [vmem:[#allocation5 + $0x10] sm:$0xff]  ;;  %v105_v16 = vld [vmem:[#allocation5 + $0x18] sm:$0xff]  ;;  %v412_v23 = vld [vmem:[#allocation8 + $0xc0] sm:$0xff] }
  0x1e   :  { %147 = vmatpush.msra.mxu2 %v102_v6  ;;  %167 = vmatpush.msra.mxu3 %v103_v7  ;;  %v418_v17 = vld [vmem:[#allocation8 + $0xf0] sm:$0xff]  ;;  %v444_v24 = vld [vmem:[#allocation8 + $0x1c0] sm:$0xff]  ;;  %v1124_v56 = vld [vmem:[#allocation7] sm:$0xf] }
  0x1f   :  { %866 = vmatmul.msk.f32.vlgmr.msra.gmra.mxu2 %vm128_vm0, %v101_v8  ;;  %867 = vmatmul.msk.f32.vlgmr.msra.gmra.mxu3 %vm128_vm0, %v101_v8  ;;  %v450_v18 = vld [vmem:[#allocation8 + $0x1f0] sm:$0xff]  ;;  %v408_v29 = vld [vmem:[#allocation8 + $0xa0] sm:$0xff]  ;;  %v120_v1 = vperm.slane %v1124_v56, 0  ;;  %v121_v2 = vperm.slane %v1124_v56, 1 }
  0x20   :  { %184 = vmatpush.msrb.mxu2 %v116_v9  ;;  %204 = vmatpush.msrb.mxu3 %v117_v10  ;;  %v414_v21 = vld [vmem:[#allocation8 + $0xd0] sm:$0xff]  ;;  %v440_v30 = vld [vmem:[#allocation8 + $0x1a0] sm:$0xff] }
  0x21   :  { %522 = vmatpush.msra.mxu0 %v418_v17  ;;  %542 = vmatpush.msra.mxu1 %v450_v18  ;;  %v446_v22 = vld [vmem:[#allocation8 + $0x1d0] sm:$0xff]  ;;  %v480_v31 = vld [vmem:[#allocation8 + $0x2e0] sm:$0xff]  ;;  %v451_v17 = vld [vmem:[#allocation8 + $0x1f8] sm:$0xff] }
  0x22   :  { %185 = vmatpush.msrb.mxu2 %v112_v11  ;;  %205 = vmatpush.msrb.mxu3 %v113_v12  ;;  %v410_v25 = vld [vmem:[#allocation8 + $0xb0] sm:$0xff]  ;;  %v512_v32 = vld [vmem:[#allocation8 + $0x3e0] sm:$0xff] }
  0x23   :  { %523 = vmatpush.msra.mxu0 %v416_v19  ;;  %543 = vmatpush.msra.mxu1 %v448_v20  ;;  %v442_v26 = vld [vmem:[#allocation8 + $0x1b0] sm:$0xff]  ;;  %v404_v37 = vld [vmem:[#allocation8 + $0x80] sm:$0xff] }
  0x24   :  { %186 = vmatpush.msrb.mxu2 %v108_v13  ;;  %206 = vmatpush.msrb.mxu3 %v109_v14  ;;  %v482_v27 = vld [vmem:[#allocation8 + $0x2f0] sm:$0xff]  ;;  %v436_v38 = vld [vmem:[#allocation8 + $0x180] sm:$0xff] }
  0x25   :  { %524 = vmatpush.msra.mxu0 %v414_v21  ;;  %544 = vmatpush.msra.mxu1 %v446_v22  ;;  %v514_v28 = vld [vmem:[#allocation8 + $0x3f0] sm:$0xff]  ;;  %v476_v39 = vld [vmem:[#allocation8 + $0x2c0] sm:$0xff]  ;;  %v417_v22 = vld [vmem:[#allocation8 + $0xe8] sm:$0xff] }
  0x26   :  { %187 = vmatpush.msrb.mxu2 %v104_v15  ;;  %207 = vmatpush.msrb.mxu3 %v105_v16  ;;  %v406_v33 = vld [vmem:[#allocation8 + $0x90] sm:$0xff]  ;;  %v508_v40 = vld [vmem:[#allocation8 + $0x3c0] sm:$0xff]  ;;  %v419_v16 = vld [vmem:[#allocation8 + $0xf8] sm:$0xff] }
  0x27   :  { %868 = vmatmul.msk.f32.vlgmr.msrb.gmra.mxu2 %vm128_vm0, %v101_v8  ;;  %869 = vmatmul.msk.f32.vlgmr.msrb.gmra.mxu3 %vm128_vm0, %v101_v8  ;;  %v438_v34 = vld [vmem:[#allocation8 + $0x190] sm:$0xff]  ;;  %v400_v45 = vld [vmem:[#allocation8 + $0x60] sm:$0xff] }
  0x28   :  { %525 = vmatpush.msra.mxu0 %v412_v23  ;;  %545 = vmatpush.msra.mxu1 %v444_v24  ;;  %v478_v35 = vld [vmem:[#allocation8 + $0x2d0] sm:$0xff]  ;;  %v432_v46 = vld [vmem:[#allocation8 + $0x160] sm:$0xff]  ;;  %v449_v23 = vld [vmem:[#allocation8 + $0x1e8] sm:$0xff] }
  0x29   :  { %562 = vmatpush.msra.mxu2 %v482_v27  ;;  %582 = vmatpush.msra.mxu3 %v514_v28  ;;  %v510_v36 = vld [vmem:[#allocation8 + $0x3d0] sm:$0xff]  ;;  %v472_v47 = vld [vmem:[#allocation8 + $0x2a0] sm:$0xff]  ;;  %v122_v27 = vperm.slane %v1124_v56, 2  ;;  %v123_v28 = vperm.slane %v1124_v56, 3  ;;  %v409_v56 = vld [vmem:[#allocation8 + $0xa8] sm:$0xff] }
  0x2a   :  { %526 = vmatpush.msra.mxu0 %v410_v25  ;;  %546 = vmatpush.msra.mxu1 %v442_v26  ;;  %v402_v41 = vld [vmem:[#allocation8 + $0x70] sm:$0xff]  ;;  %v504_v48 = vld [vmem:[#allocation8 + $0x3a0] sm:$0xff] }
  0x2b   :  { %563 = vmatpush.msra.mxu2 %v480_v31  ;;  %583 = vmatpush.msra.mxu3 %v512_v32  ;;  %v434_v42 = vld [vmem:[#allocation8 + $0x170] sm:$0xff]  ;;  %v396_v53 = vld [vmem:[#allocation8 + $0x40] sm:$0xff]  ;;  %v447_v31 = vld [vmem:[#allocation8 + $0x1d8] sm:$0xff] }
  0x2c   :  { %527 = vmatpush.msra.mxu0 %v408_v29  ;;  %547 = vmatpush.msra.mxu1 %v440_v30  ;;  %v474_v43 = vld [vmem:[#allocation8 + $0x2b0] sm:$0xff]  ;;  %v428_v54 = vld [vmem:[#allocation8 + $0x140] sm:$0xff]  ;;  %v415_v30 = vld [vmem:[#allocation8 + $0xd8] sm:$0xff] }
  0x2d   :  { %564 = vmatpush.msra.mxu2 %v478_v35  ;;  %584 = vmatpush.msra.mxu3 %v510_v36  ;;  %v506_v44 = vld [vmem:[#allocation8 + $0x3b0] sm:$0xff]  ;;  %v468_v55 = vld [vmem:[#allocation8 + $0x280] sm:$0xff]  ;;  %v413_v36 = vld [vmem:[#allocation8 + $0xc8] sm:$0xff] }
  0x2e   :  { %528 = vmatpush.msra.mxu0 %v406_v33  ;;  %548 = vmatpush.msra.mxu1 %v438_v34  ;;  %v398_v49 = vld [vmem:[#allocation8 + $0x50] sm:$0xff]  ;;  %v500_v57 = vld [vmem:[#allocation8 + $0x380] sm:$0xff] }
  0x2f   :  { %565 = vmatpush.msra.mxu2 %v476_v39  ;;  %585 = vmatpush.msra.mxu3 %v508_v40  ;;  %v430_v50 = vld [vmem:[#allocation8 + $0x150] sm:$0xff]  ;;  %v392_v62 = vld [vmem:[#allocation8 + $0x20] sm:$0xff] }
  0x30   :  { %529 = vmatpush.msra.mxu0 %v404_v37  ;;  %549 = vmatpush.msra.mxu1 %v436_v38  ;;  %v470_v51 = vld [vmem:[#allocation8 + $0x290] sm:$0xff]  ;;  %v424_v63 = vld [vmem:[#allocation8 + $0x120] sm:$0xff]  ;;  %v445_v37 = vld [vmem:[#allocation8 + $0x1c8] sm:$0xff] }
  0x31   :  { %566 = vmatpush.msra.mxu2 %v474_v43  ;;  %586 = vmatpush.msra.mxu3 %v506_v44  ;;  %v502_v52 = vld [vmem:[#allocation8 + $0x390] sm:$0xff]  ;;  %v464_v0 = vld [vmem:[#allocation8 + $0x260] sm:$0xff] }
  0x32   :  { %530 = vmatpush.msra.mxu0 %v402_v41  ;;  %550 = vmatpush.msra.mxu1 %v434_v42  ;;  %v394_v58 = vld [vmem:[#allocation8 + $0x30] sm:$0xff]  ;;  %v496_v3 = vld [vmem:[#allocation8 + $0x360] sm:$0xff] }
  0x33   :  { %567 = vmatpush.msra.mxu2 %v472_v47  ;;  %587 = vmatpush.msra.mxu3 %v504_v48  ;;  %v426_v59 = vld [vmem:[#allocation8 + $0x130] sm:$0xff]  ;;  %v388_v10 = vld [vmem:[#allocation8] sm:$0xff]  ;;  %v443_v47 = vld [vmem:[#allocation8 + $0x1b8] sm:$0xff] }
  0x34   :  { %531 = vmatpush.msra.mxu0 %v400_v45  ;;  %551 = vmatpush.msra.mxu1 %v432_v46  ;;  %v466_v60 = vld [vmem:[#allocation8 + $0x270] sm:$0xff]  ;;  %v420_v11 = vld [vmem:[#allocation8 + $0x100] sm:$0xff]  ;;  %v411_v46 = vld [vmem:[#allocation8 + $0xb8] sm:$0xff] }
  0x35   :  { %568 = vmatpush.msra.mxu2 %v470_v51  ;;  %588 = vmatpush.msra.mxu3 %v502_v52  ;;  %v498_v61 = vld [vmem:[#allocation8 + $0x370] sm:$0xff]  ;;  %v460_v12 = vld [vmem:[#allocation8 + $0x240] sm:$0xff]  ;;  %v483_v48 = vld [vmem:[#allocation8 + $0x2f8] sm:$0xff] }
  0x36   :  { %532 = vmatpush.msra.mxu0 %v398_v49  ;;  %552 = vmatpush.msra.mxu1 %v430_v50  ;;  %v390_v4 = vld [vmem:[#allocation8 + $0x10] sm:$0xff]  ;;  %v492_v15 = vld [vmem:[#allocation8 + $0x340] sm:$0xff]  ;;  %v515_v49 = vld [vmem:[#allocation8 + $0x3f8] sm:$0xff] }
  0x37   :  { %569 = vmatpush.msra.mxu2 %v468_v55  ;;  %589 = vmatpush.msra.mxu3 %v500_v57  ;;  %v422_v5 = vld [vmem:[#allocation8 + $0x110] sm:$0xff]  ;;  %v456_v24 = vld [vmem:[#allocation8 + $0x220] sm:$0xff]  ;;  %v441_v57 = vld [vmem:[#allocation8 + $0x1a8] sm:$0xff] }
  0x38   :  { %533 = vmatpush.msra.mxu0 %v396_v53  ;;  %553 = vmatpush.msra.mxu1 %v428_v54  ;;  %v462_v6 = vld [vmem:[#allocation8 + $0x250] sm:$0xff]  ;;  %v488_v29 = vld [vmem:[#allocation8 + $0x320] sm:$0xff] }
  0x39   :  { %570 = vmatpush.msra.mxu2 %v466_v60  ;;  %590 = vmatpush.msra.mxu3 %v498_v61  ;;  %v494_v7 = vld [vmem:[#allocation8 + $0x350] sm:$0xff]  ;;  %v452_v40 = vld [vmem:[#allocation8 + $0x200] sm:$0xff]  ;;  %v513_v60 = vld [vmem:[#allocation8 + $0x3e8] sm:$0xff] }
  0x3a   :  { %534 = vmatpush.msra.mxu0 %v394_v58  ;;  %554 = vmatpush.msra.mxu1 %v426_v59  ;;  %v458_v18 = vld [vmem:[#allocation8 + $0x230] sm:$0xff]  ;;  %v484_v41 = vld [vmem:[#allocation8 + $0x300] sm:$0xff]  ;;  %v481_v59 = vld [vmem:[#allocation8 + $0x2e8] sm:$0xff] }
  0x3b   :  { %571 = vmatpush.msra.mxu2 %v464_v0  ;;  %591 = vmatpush.msra.mxu3 %v496_v3  ;;  %v490_v19 = vld [vmem:[#allocation8 + $0x330] sm:$0xff]  ;;  %v407_v61 = vld [vmem:[#allocation8 + $0x98] sm:$0xff] }
  0x3c   :  { %535 = vmatpush.msra.mxu0 %v392_v62  ;;  %555 = vmatpush.msra.mxu1 %v424_v63  ;;  %v454_v32 = vld [vmem:[#allocation8 + $0x210] sm:$0xff]  ;;  %v511_v3 = vld [vmem:[#allocation8 + $0x3d8] sm:$0xff] }
  0x3d   :  { %572 = vmatpush.msra.mxu2 %v462_v6  ;;  %592 = vmatpush.msra.mxu3 %v494_v7  ;;  %v486_v33 = vld [vmem:[#allocation8 + $0x310] sm:$0xff]  ;;  %v405_v6 = vld [vmem:[#allocation8 + $0x88] sm:$0xff] }
  0x3e   :  { %536 = vmatpush.msra.mxu0 %v390_v4  ;;  %556 = vmatpush.msra.mxu1 %v422_v5  ;;  %v437_v7 = vld [vmem:[#allocation8 + $0x188] sm:$0xff] }
  0x3f   :  { %573 = vmatpush.msra.mxu2 %v460_v12  ;;  %593 = vmatpush.msra.mxu3 %v492_v15  ;;  %v509_v12 = vld [vmem:[#allocation8 + $0x3c8] sm:$0xff] }
  0x40   :  { %537 = vmatpush.msra.mxu0 %v388_v10  ;;  %557 = vmatpush.msra.mxu1 %v420_v11  ;;  %v477_v11 = vld [vmem:[#allocation8 + $0x2c8] sm:$0xff] }
  0x41   :  { %574 = vmatpush.msra.mxu2 %v458_v18  ;;  %594 = vmatpush.msra.mxu3 %v490_v19  ;;  %v475_v18 = vld [vmem:[#allocation8 + $0x2b8] sm:$0xff] }
  0x42   :  { %602 = vmatpush.msrb.mxu0 %v419_v16  ;;  %622 = vmatpush.msrb.mxu1 %v451_v17  ;;  %v403_v16 = vld [vmem:[#allocation8 + $0x78] sm:$0xff] }
  0x43   :  { %575 = vmatpush.msra.mxu2 %v456_v24  ;;  %595 = vmatpush.msra.mxu3 %v488_v29  ;;  %v435_v17 = vld [vmem:[#allocation8 + $0x178] sm:$0xff] }
  0x44   :  { %603 = vmatpush.msrb.mxu0 %v417_v22  ;;  %623 = vmatpush.msrb.mxu1 %v449_v23 }
  0x45   :  { %576 = vmatpush.msra.mxu2 %v454_v32  ;;  %596 = vmatpush.msra.mxu3 %v486_v33  ;;  %v507_v33 = vld [vmem:[#allocation8 + $0x3b8] sm:$0xff] }
  0x46   :  { %604 = vmatpush.msrb.mxu0 %v415_v30  ;;  %624 = vmatpush.msrb.mxu1 %v447_v31 }
  0x47   :  { %577 = vmatpush.msra.mxu2 %v452_v40  ;;  %597 = vmatpush.msra.mxu3 %v484_v41  ;;  %v473_v41 = vld [vmem:[#allocation8 + $0x2a8] sm:$0xff] }
  0x48   :  { %605 = vmatpush.msrb.mxu0 %v413_v36  ;;  %625 = vmatpush.msrb.mxu1 %v445_v37  ;;  %v401_v36 = vld [vmem:[#allocation8 + $0x68] sm:$0xff] }
  0x49   :  { %642 = vmatpush.msrb.mxu2 %v483_v48  ;;  %662 = vmatpush.msrb.mxu3 %v515_v49  ;;  %v433_v37 = vld [vmem:[#allocation8 + $0x168] sm:$0xff] }
  0x4a   :  { %606 = vmatpush.msrb.mxu0 %v411_v46  ;;  %626 = vmatpush.msrb.mxu1 %v443_v47 }
  0x4b   :  { %643 = vmatpush.msrb.mxu2 %v481_v59  ;;  %663 = vmatpush.msrb.mxu3 %v513_v60  ;;  %v503_v60 = vld [vmem:[#allocation8 + $0x398] sm:$0xff] }
  0x4c   :  { %607 = vmatpush.msrb.mxu0 %v409_v56  ;;  %627 = vmatpush.msrb.mxu1 %v441_v57 }
  0x4d   :  { %664 = vmatpush.msrb.mxu3 %v511_v3  ;;  %v501_v3 = vld [vmem:[#allocation8 + $0x388] sm:$0xff] }
  0x4e   :  { %608 = vmatpush.msrb.mxu0 %v407_v61  ;;  %v397_v61 = vld [vmem:[#allocation8 + $0x48] sm:$0xff] }
  0x4f   :  { %665 = vmatpush.msrb.mxu3 %v509_v12 }
  0x50   :  { %609 = vmatpush.msrb.mxu0 %v405_v6 }
  0x51   :  { %666 = vmatpush.msrb.mxu3 %v507_v33 }
  0x52   :  { %610 = vmatpush.msrb.mxu0 %v403_v16 }
  0x54   :  { %611 = vmatpush.msrb.mxu0 %v401_v36 }
  0xa2   :  { %v149_v8 = vpop.f32.mrf.mxu2  ;;  %v169_v9 = vpop.f32.mrf.mxu3 }
  0xa3   :  { %v1128_v13 = vadd.f32 %v149_v8, %v120_v1  ;;  %v1130_v14 = vadd.f32 %v169_v9, %v121_v2  ;;  %v439_v1 = vld [vmem:[#allocation8 + $0x198] sm:$0xff] }
  0xa4   :  { %v479_v2 = vld [vmem:[#allocation8 + $0x2d8] sm:$0xff]  ;;  %628 = vmatpush.msrb.mxu1 %v439_v1 }
  0xa5   :  { %v1133_v20 = vmul.f32 0.70710677, %v1128_v13  ;;  %v1136_v21 = vmul.f32 0.70710677, %v1130_v14  ;;  %644 = vmatpush.msrb.mxu2 %v479_v2  ;;  %v469_v2 = vld [vmem:[#allocation8 + $0x288] sm:$0xff] }
  0xa6   :  { %629 = vmatpush.msrb.mxu1 %v437_v7 }
  0xa7   :  { %v220_v25 = vmul.f32 %v1133_v20, %v1133_v20  ;;  %v260_v26 = vmul.f32 %v1136_v21, %v1136_v21  ;;  %645 = vmatpush.msrb.mxu2 %v477_v11 }
  0xa8   :  { %630 = vmatpush.msrb.mxu1 %v435_v17 }
  0xa9   :  { %v1144_v34 = vmin.f32 %v220_v25, 16.0  ;;  %v1146_v35 = vmin.f32 %v260_v26, 16.0  ;;  %646 = vmatpush.msrb.mxu2 %v475_v18 }
  0xaa   :  { %v189_v38 = vpop.f32.mrf.mxu2  ;;  %v209_v39 = vpop.f32.mrf.mxu3  ;;  %631 = vmatpush.msrb.mxu1 %v433_v37 }
  0xab   :  { %v222_v42 = vmul.f32 2.1237322e-06, %v1144_v34  ;;  %v262_v43 = vmul.f32 2.1237322e-06, %v1146_v35  ;;  %v1150_v44 = vadd.f32 %v189_v38, %v122_v27  ;;  %v1152_v45 = vadd.f32 %v209_v39, %v123_v28  ;;  %647 = vmatpush.msrb.mxu2 %v473_v41 }
  0xac   :  { %v233_v50 = vmul.f32 3.8918573e-05, %v1144_v34  ;;  %v273_v53 = vmul.f32 3.8918573e-05, %v1146_v35 }
  0xad   :  { %v223_v51 = vadd.f32 0.00028619796, %v222_v42  ;;  %v263_v52 = vadd.f32 0.00028619796, %v262_v43  ;;  %v1157_v54 = vmul.f32 0.70710677, %v1150_v44 }
  0xae   :  { %v1160_v55 = vmul.f32 0.70710677, %v1152_v45  ;;  %v234_v62 = vadd.f32 0.001143296, %v233_v50  ;;  %v274_v15 = vadd.f32 0.001143296, %v273_v53 }
  0xaf   :  { %v224_v58 = vmul.f32 %v223_v51, %v1144_v34  ;;  %v300_v63 = vmul.f32 %v1157_v54, %v1157_v54  ;;  %v264_v5 = vmul.f32 %v263_v52, %v1146_v35  ;;  %v505_v42 = vld [vmem:[#allocation8 + $0x3a8] sm:$0xff]  ;;  %v399_v43 = vld [vmem:[#allocation8 + $0x58] sm:$0xff] }
  0xb0   :  { %v340_v0 = vmul.f32 %v1160_v55, %v1160_v55  ;;  %v235_v8 = vmul.f32 %v234_v62, %v1144_v34  ;;  %v431_v50 = vld [vmem:[#allocation8 + $0x158] sm:$0xff]  ;;  %v275_v52 = vmul.f32 %v274_v15, %v1146_v35  ;;  %667 = vmatpush.msrb.mxu3 %v505_v42  ;;  %612 = vmatpush.msrb.mxu0 %v399_v43  ;;  %v429_v62 = vld [vmem:[#allocation8 + $0x148] sm:$0xff] }
  0xb1   :  { %v225_v4 = vadd.f32 0.0036580483, %v224_v58  ;;  %v1169_v9 = vmin.f32 %v300_v63, 16.0  ;;  %v265_v26 = vadd.f32 0.0036580483, %v264_v5  ;;  %v471_v51 = vld [vmem:[#allocation8 + $0x298] sm:$0xff]  ;;  %632 = vmatpush.msrb.mxu1 %v431_v50 }
  0xb2   :  { %v1171_v10 = vmin.f32 %v340_v0, 16.0  ;;  %v236_v19 = vadd.f32 0.014752088, %v235_v8  ;;  %648 = vmatpush.msrb.mxu2 %v471_v51  ;;  %668 = vmatpush.msrb.mxu3 %v503_v60  ;;  %v276_v6 = vadd.f32 0.014752088, %v275_v52  ;;  %v393_v50 = vld [vmem:[#allocation8 + $0x28] sm:$0xff] }
  0xb3   :  { %v302_v22 = vmul.f32 2.1237322e-06, %v1169_v9  ;;  %v313_v23 = vmul.f32 3.8918573e-05, %v1169_v9  ;;  %v226_v25 = vmul.f32 %v225_v4, %v1144_v34  ;;  %v266_v48 = vmul.f32 %v265_v26, %v1146_v35  ;;  %613 = vmatpush.msrb.mxu0 %v397_v61  ;;  %633 = vmatpush.msrb.mxu1 %v429_v62  ;;  %v425_v51 = vld [vmem:[#allocation8 + $0x128] sm:$0xff]  ;;  %v423_v60 = vld [vmem:[#allocation8 + $0x118] sm:$0xff] }
  0xb4   :  { %v342_v24 = vmul.f32 2.1237322e-06, %v1171_v10  ;;  %v353_v27 = vmul.f32 3.8918573e-05, %v1171_v10  ;;  %v237_v28 = vmul.f32 %v236_v19, %v1144_v34  ;;  %649 = vmatpush.msrb.mxu2 %v469_v2  ;;  %669 = vmatpush.msrb.mxu3 %v501_v3  ;;  %v277_v16 = vmul.f32 %v276_v6, %v1146_v35  ;;  %v463_v61 = vld [vmem:[#allocation8 + $0x258] sm:$0xff]  ;;  %v389_v3 = vld [vmem:[#allocation8 + $0x8] sm:$0xff] }
  0xb5   :  { %v303_v29 = vadd.f32 0.00028619796, %v302_v22  ;;  %v314_v30 = vadd.f32 0.001143296, %v313_v23  ;;  %v227_v47 = vadd.f32 0.05243302, %v226_v25 }
  0xb6   :  { %v343_v31 = vadd.f32 0.00028619796, %v342_v24  ;;  %v354_v32 = vadd.f32 0.001143296, %v353_v27  ;;  %v238_v46 = vadd.f32 0.112945676, %v237_v28 }
  0xb7   :  { %v304_v38 = vmul.f32 %v303_v29, %v1169_v9  ;;  %v315_v39 = vmul.f32 %v314_v30, %v1169_v9  ;;  %v267_v7 = vadd.f32 0.05243302, %v266_v48  ;;  %v228_v17 = vmul.f32 %v227_v47, %v1144_v34  ;;  %v427_v47 = vld [vmem:[#allocation8 + $0x138] sm:$0xff]  ;;  %v461_v6 = vld [vmem:[#allocation8 + $0x248] sm:$0xff] }
  0xb8   :  { %v344_v40 = vmul.f32 %v343_v31, %v1171_v10  ;;  %v355_v49 = vmul.f32 %v354_v32, %v1171_v10  ;;  %v239_v58 = vmul.f32 %v238_v46, %v1144_v34  ;;  %v278_v24 = vadd.f32 0.112945676, %v277_v16  ;;  %v395_v46 = vld [vmem:[#allocation8 + $0x38] sm:$0xff]  ;;  %634 = vmatpush.msrb.mxu1 %v427_v47 }
  0xb9   :  { %v305_v53 = vadd.f32 0.0036580483, %v304_v38  ;;  %v316_v56 = vadd.f32 0.014752088, %v315_v39  ;;  %v268_v25 = vmul.f32 %v267_v7, %v1146_v35  ;;  %v229_v29 = vadd.f32 0.18741608, %v228_v17  ;;  %614 = vmatpush.msrb.mxu0 %v395_v46 }
  0xba   :  { %v345_v57 = vadd.f32 0.0036580483, %v344_v40  ;;  %v356_v59 = vadd.f32 0.014752088, %v355_v49  ;;  %v240_v4 = vadd.f32 0.4994258, %v239_v58  ;;  %v279_v32 = vmul.f32 %v278_v24, %v1146_v35  ;;  %635 = vmatpush.msrb.mxu1 %v425_v51 }
  0xbb   :  { %v306_v63 = vmul.f32 %v305_v53, %v1169_v9  ;;  %v317_v0 = vmul.f32 %v316_v56, %v1169_v9  ;;  %v269_v36 = vadd.f32 0.18741608, %v268_v25  ;;  %v230_v42 = vmul.f32 %v229_v29, %v1144_v34  ;;  %v467_v48 = vld [vmem:[#allocation8 + $0x278] sm:$0xff]  ;;  %v497_v56 = vld [vmem:[#allocation8 + $0x368] sm:$0xff]  ;;  %615 = vmatpush.msrb.mxu0 %v393_v50 }
  0xbc   :  { %v346_v1 = vmul.f32 %v345_v57, %v1171_v10  ;;  %v357_v5 = vmul.f32 %v356_v59, %v1171_v10  ;;  %v241_v11 = vmul.f32 %v240_v4, %v1144_v34  ;;  %v280_v40 = vadd.f32 0.4994258, %v279_v32  ;;  %v499_v49 = vld [vmem:[#allocation8 + $0x378] sm:$0xff]  ;;  %650 = vmatpush.msrb.mxu2 %v467_v48  ;;  %v465_v34 = vld [vmem:[#allocation8 + $0x268] sm:$0xff]  ;;  %636 = vmatpush.msrb.mxu1 %v423_v60 }
  0xbd   :  { %v318_v8 = vadd.f32 0.112945676, %v317_v0  ;;  %v307_v12 = vadd.f32 0.05243302, %v306_v63  ;;  %v270_v52 = vmul.f32 %v269_v36, %v1146_v35  ;;  %670 = vmatpush.msrb.mxu3 %v499_v49  ;;  %v391_v59 = vld [vmem:[#allocation8 + $0x18] sm:$0xff]  ;;  %v493_v7 = vld [vmem:[#allocation8 + $0x348] sm:$0xff] }
  0xbe   :  { %v358_v15 = vadd.f32 0.112945676, %v357_v5  ;;  %v347_v19 = vadd.f32 0.05243302, %v346_v1  ;;  %v1194_v22 = vadd.f32 1.0, %v241_v11  ;;  %v281_v58 = vmul.f32 %v280_v40, %v1146_v35  ;;  %651 = vmatpush.msrb.mxu2 %v465_v34  ;;  %v495_v2 = vld [vmem:[#allocation8 + $0x358] sm:$0xff]  ;;  %616 = vmatpush.msrb.mxu0 %v391_v59 }
  0xbf   :  { %v319_v18 = vmul.f32 %v318_v8, %v1169_v9  ;;  %v308_v27 = vmul.f32 %v307_v12, %v1169_v9  ;;  %v231_v62 = vadd.f32 1.1283791, %v230_v42  ;;  %671 = vmatpush.msrb.mxu3 %v497_v56  ;;  %v421_v35 = vld [vmem:[#allocation8 + $0x108] sm:$0xff]  ;;  %v491_v24 = vld [vmem:[#allocation8 + $0x338] sm:$0xff] }
  0xc0   :  { %v359_v23 = vmul.f32 %v358_v15, %v1171_v10  ;;  %889 = vrcp.f32 %v1194_v22  ;;  %v348_v31 = vmul.f32 %v347_v19, %v1171_v10  ;;  %v252_v57 = vand.u32 2147483647, %v1194_v22  ;;  %652 = vmatpush.msrb.mxu2 %v463_v61  ;;  %617 = vmatpush.msrb.mxu0 %v389_v3  ;;  %v457_v29 = vld [vmem:[#allocation8 + $0x228] sm:$0xff]  ;;  %v455_v40 = vld [vmem:[#allocation8 + $0x218] sm:$0xff] }
  0xc1   :  { %v320_v26 = vadd.f32 0.4994258, %v319_v18  ;;  %v309_v38 = vadd.f32 0.18741608, %v308_v27  ;;  %v254_v4 = vand.u32 2147483648, %v1194_v22  ;;  %v1221_v5 = vadd.f32 1.0, %v281_v58  ;;  %672 = vmatpush.msrb.mxu3 %v495_v2  ;;  %637 = vmatpush.msrb.mxu1 %v421_v35 }
  0xc2   :  { %v360_v28 = vadd.f32 0.4994258, %v359_v23  ;;  %v349_v43 = vadd.f32 0.18741608, %v348_v31  ;;  %vm248_vm2 = vweird.f32 %v1194_v22  ;;  %vm1237_vm3 = vcmp.eq.f32.partialorder %v252_v57, 8.507059e+37  ;;  %653 = vmatpush.msrb.mxu2 %v461_v6  ;;  %v459_v23 = vld [vmem:[#allocation8 + $0x238] sm:$0xff] }
  0xc3   :  { %v321_v30 = vmul.f32 %v320_v26, %v1169_v9  ;;  %v310_v63 = vmul.f32 %v309_v38, %v1169_v9  ;;  %v1226_v9 = vmul.f32 0.5, %v1128_v13  ;;  %673 = vmatpush.msrb.mxu3 %v493_v7  ;;  %v232_v25 = vmul.f32 %v231_v62, %v1133_v20  ;;  %v487_v42 = vld [vmem:[#allocation8 + $0x318] sm:$0xff]  ;;  %v453_v50 = vld [vmem:[#allocation8 + $0x208] sm:$0xff] }
  0xc4   :  { %v361_v33 = vmul.f32 %v360_v28, %v1171_v10  ;;  %v350_v0 = vmul.f32 %v349_v43, %v1171_v10  ;;  %v1228_v10 = vadd.f32 1.1283791, %v270_v52  ;;  %v255_v28 = vor.u32 1.1754944e-38, %v254_v4  ;;  %654 = vmatpush.msrb.mxu2 %v459_v23  ;;  %v485_v51 = vld [vmem:[#allocation8 + $0x308] sm:$0xff] }
  0xc5   :  { %v1204_v37 = vadd.f32 1.0, %v321_v30  ;;  %v311_v13 = vadd.f32 1.1283791, %v310_v63  ;;  %v489_v30 = vld [vmem:[#allocation8 + $0x328] sm:$0xff]  ;;  %674 = vmatpush.msrb.mxu3 %v491_v24  ;;  %v292_v61 = vand.u32 2147483647, %v1221_v5  ;;  %vm288_vm14 = vweird.f32 %v1221_v5 }
  0xc6   :  { %v1206_v39 = vadd.f32 1.0, %v361_v33  ;;  %v1208_v41 = vpop.eup %889  ;;  %v351_v17 = vadd.f32 1.1283791, %v350_v0  ;;  %655 = vmatpush.msrb.mxu2 %v457_v29  ;;  %v294_v62 = vand.u32 2147483648, %v1221_v5  ;;  %v214_v35 = vmul.f32 0.5, %v1150_v44 }
  0xc7   :  { %891 = vrcp.f32 %v1204_v37  ;;  %v244_v53 = vmul.f32 %v1208_v41, %v1194_v22  ;;  %vm249_vm1 = vweird.f32 %v1208_v41  ;;  %v332_v27 = vand.u32 2147483647, %v1204_v37  ;;  %675 = vmatpush.msrb.mxu3 %v489_v30 }
  0xc8   :  { %893 = vrcp.f32 %v1206_v39  ;;  %vm250_vm4 = vmor %vm248_vm2, %vm249_vm1  ;;  %v334_v31 = vand.u32 2147483648, %v1204_v37  ;;  %v372_v33 = vand.u32 2147483647, %v1206_v39  ;;  %v374_v38 = vand.u32 2147483648, %v1206_v39  ;;  %656 = vmatpush.msrb.mxu2 %v455_v40  ;;  %v784_v40 = vld [vmem:[#allocation10 + $0x70] sm:$0xff] }
  0xc9   :  { %v245_v1 = vsub.f32 1.0, %v244_v53  ;;  %895 = vrcp.f32 %v1221_v5  ;;  %v312_v43 = vmul.f32 %v311_v13, %v1157_v54  ;;  %vm328_vm7 = vweird.f32 %v1204_v37  ;;  %676 = vmatpush.msrb.mxu3 %v487_v42 }
  0xca   :  { %v352_v49 = vmul.f32 %v351_v17, %v1160_v55  ;;  %vm368_vm8 = vweird.f32 %v1206_v39  ;;  %v335_v54 = vor.u32 1.1754944e-38, %v334_v31  ;;  %vm333_vm10 = vcmp.eq.f32.partialorder %v332_v27, 8.507059e+37  ;;  %657 = vmatpush.msrb.mxu2 %v453_v50  ;;  %v782_v50 = vld [vmem:[#allocation10 + $0x60] sm:$0xff] }
  0xcb   :  { %v246_v11 = vmul.f32 %v1208_v41, %v245_v1  ;;  %vm373_vm12 = vcmp.eq.f32.partialorder %v372_v33, 8.507059e+37  ;;  %v375_v55 = vor.u32 1.1754944e-38, %v374_v38  ;;  %677 = vmatpush.msrb.mxu3 %v485_v51  ;;  %v215_v7 = vmul.f32 0.5, %v1152_v45 }
  0xcc   :  { %vm293_vm0 = vcmp.eq.f32.partialorder %v292_v61, 8.507059e+37  ;;  %v213_v44 = vmul.f32 0.5, %v1130_v14  ;;  %v779_v61 = vld [vmem:[#allocation10 + $0x48] sm:$0xff] }
  0xcd   :  { %v1223_v8 = vpop.eup %891  ;;  %v247_v19 = vadd.f32 %v1208_v41, %v246_v11  ;;  %v272_v11 = vmul.f32 %v1228_v10, %v1136_v21  ;;  %v516_v21 = vld [vmem:[%s1338_s4] sm:$0x3] }
  0xce   :  { %v1232_v12 = vpop.eup %893  ;;  %v324_v15 = vmul.f32 %v1223_v8, %v1204_v37  ;;  %vm329_vm5 = vweird.f32 %v1223_v8  ;;  %v519_v27 = vperm.slane %v516_v21, 1 }
  0xcf   :  { %v364_v18 = vmul.f32 %v1232_v12, %v1206_v39  ;;  %v251_v36 = vsel %vm250_vm4, %v1208_v41, %v247_v19  ;;  %vm369_vm6 = vweird.f32 %v1232_v12  ;;  %v896_v47 = vpop.eup %895  ;;  %vm330_vm9 = vmor %vm328_vm7, %vm329_vm5  ;;  %v518_v19 = vperm.slane %v516_v21, 0 }
  0xd0   :  { %v325_v26 = vsub.f32 1.0, %v324_v15  ;;  %v256_v22 = vsel %vm1237_vm3, %v255_v28, %v251_v36  ;;  %v284_v34 = vmul.f32 %v896_v47, %v1221_v5  ;;  %vm370_vm11 = vmor %vm368_vm8, %vm369_vm6  ;;  %vm289_vm13 = vweird.f32 %v896_v47 }
  0xd1   :  { %v365_v32 = vsub.f32 1.0, %v364_v18  ;;  %v257_v41 = vmul.f32 %v256_v22, %v232_v25  ;;  %vm290_vm15 = vmor %vm288_vm14, %vm289_vm13 }
  0xd2   :  { %v326_v20 = vmul.f32 %v1223_v8, %v325_v26  ;;  %v285_v58 = vsub.f32 1.0, %v284_v34  ;;  %v801_v34 = vld [vmem:[#allocation10 + $0xf8] sm:$0xff] }
  0xd3   :  { %v366_v46 = vmul.f32 %v1232_v12, %v365_v32  ;;  %v870_v53 = vclamps-f32 %v257_v41, 1.0  ;;  %v783_v41 = vld [vmem:[#allocation10 + $0x68] sm:$0xff] }
  0xd4   :  { %v327_v48 = vadd.f32 %v1223_v8, %v326_v20  ;;  %v286_v1 = vmul.f32 %v896_v47, %v285_v58  ;;  %v785_v20 = vld [vmem:[#allocation10 + $0x78] sm:$0xff] }
  0xd5   :  { %v367_v52 = vadd.f32 %v1232_v12, %v366_v46  ;;  %v380_v57 = vadd.f32 1.0, %v870_v53  ;;  %v781_v53 = vld [vmem:[#allocation10 + $0x58] sm:$0xff] }
  0xd6   :  { %v331_v56 = vsel %vm330_vm9, %v1223_v8, %v327_v48  ;;  %v287_v4 = vadd.f32 %v896_v47, %v286_v1  ;;  %v295_v8 = vor.u32 1.1754944e-38, %v294_v62  ;;  %v799_v62 = vld [vmem:[#allocation10 + $0xe8] sm:$0xff] }
  0xd7   :  { %v336_v37 = vsel %vm333_vm10, %v335_v54, %v331_v56  ;;  %v371_v39 = vsel %vm370_vm11, %v1232_v12, %v367_v52  ;;  %v384_v0 = vmul.f32 %v380_v57, %v1226_v9  ;;  %v800_v57 = vld [vmem:[#allocation10 + $0xf0] sm:$0xff] }
  0xd8   :  { %v337_v59 = vmul.f32 %v336_v37, %v312_v43  ;;  %v376_v60 = vsel %vm373_vm12, %v375_v55, %v371_v39  ;;  %v291_v9 = vsel %vm290_vm15, %v896_v47, %v287_v4  ;;  %v780_v39 = vld [vmem:[#allocation10 + $0x50] sm:$0xff] }
  0xd9   :  { %v377_v63 = vmul.f32 %v376_v60, %v352_v49  ;;  %538 = vmatmul.f32.vlgmr.msra.gmra.mxu0 %v384_v0  ;;  %v296_v16 = vsel %vm293_vm0, %v295_v8, %v291_v9  ;;  %v777_v8 = vld [vmem:[#allocation10 + $0x38] sm:$0xff] }
  0xda   :  { %v872_v2 = vclamps-f32 %v337_v59, 1.0  ;;  %v297_v17 = vmul.f32 %v296_v16, %v272_v11  ;;  %806 = vmatpush.msra.mxu0 %v785_v20  ;;  %v797_v11 = vld [vmem:[#allocation10 + $0xd8] sm:$0xff]  ;;  %v776_v16 = vld [vmem:[#allocation10 + $0x30] sm:$0xff]  ;;  %v771_v20 = vld [vmem:[#allocation10 + $0x8] sm:$0xff] }
  0xdb   :  { %v873_v3 = vclamps-f32 %v377_v63, 1.0 }
  0xdc   :  { %v382_v6 = vadd.f32 1.0, %v872_v2  ;;  %v871_v18 = vclamps-f32 %v297_v17, 1.0  ;;  %807 = vmatpush.msra.mxu0 %v784_v40  ;;  %v778_v2 = vld [vmem:[#allocation10 + $0x40] sm:$0xff] }
  0xdd   :  { %v383_v12 = vadd.f32 1.0, %v873_v3  ;;  %v798_v3 = vld [vmem:[#allocation10 + $0xe0] sm:$0xff] }
  0xde   :  { %v386_v15 = vmul.f32 %v382_v6, %v214_v35  ;;  %v381_v5 = vadd.f32 1.0, %v871_v18  ;;  %808 = vmatpush.msra.mxu0 %v783_v41 }
  0xdf   :  { %v387_v13 = vmul.f32 %v383_v12, %v215_v7 }
  0xe0   :  { %578 = vmatmul.f32.vlgmr.msra.gmra.mxu2 %v386_v15  ;;  %v385_v45 = vmul.f32 %v381_v5, %v213_v44  ;;  %809 = vmatpush.msra.mxu0 %v782_v50  ;;  %v775_v5 = vld [vmem:[#allocation10 + $0x28] sm:$0xff] }
  0xe1   :  { %598 = vmatmul.f32.vlgmr.msra.gmra.mxu3 %v387_v13  ;;  %618 = vmatmul.f32.vlgmr.msrb.gmra.mxu0 %v384_v0 }
  0xe2   :  { %558 = vmatmul.f32.vlgmr.msra.gmra.mxu1 %v385_v45  ;;  %810 = vmatpush.msra.mxu0 %v781_v53 }
  0xe3   :  { %826 = vmatpush.msra.mxu1 %v801_v34  ;;  %v788_v34 = vld [vmem:[#allocation10 + $0x90] sm:$0xff] }
  0xe4   :  { %811 = vmatpush.msra.mxu0 %v780_v39 }
  0xe5   :  { %827 = vmatpush.msra.mxu1 %v800_v57 }
  0xe6   :  { %812 = vmatpush.msra.mxu0 %v779_v61  ;;  %v786_v61 = vld [vmem:[#allocation10 + $0x80] sm:$0xff] }
  0xe7   :  { %828 = vmatpush.msra.mxu1 %v799_v62 }
  0xe8   :  { %658 = vmatmul.f32.vlgmr.msrb.gmra.mxu2 %v386_v15  ;;  %813 = vmatpush.msra.mxu0 %v778_v2 }
  0xe9   :  { %678 = vmatmul.f32.vlgmr.msrb.gmra.mxu3 %v387_v13  ;;  %829 = vmatpush.msra.mxu1 %v798_v3  ;;  %v796_v13 = vld [vmem:[#allocation10 + $0xd0] sm:$0xff] }
  0xea   :  { %638 = vmatmul.f32.vlgmr.msrb.gmra.mxu1 %v385_v45  ;;  %814 = vmatpush.msra.mxu0 %v777_v8  ;;  %v795_v45 = vld [vmem:[#allocation10 + $0xc8] sm:$0xff] }
  0xeb   :  { %830 = vmatpush.msra.mxu1 %v797_v11 }
  0xec   :  { %815 = vmatpush.msra.mxu0 %v776_v16 }
  0xed   :  { %831 = vmatpush.msra.mxu1 %v796_v13 }
  0xee   :  { %816 = vmatpush.msra.mxu0 %v775_v5 }
  0xef   :  { %832 = vmatpush.msra.mxu1 %v795_v45 }
 0x156   :  { %v539_v10 = vpop.f32.mrf.mxu0 }
 0x157   :  { %v540_v23 = vadd.f32 %v539_v10, %v518_v19 }
 0x15e   :  { %v619_v28 = vpop.f32.mrf.mxu0 }
 0x15f   :  { %v559_v25 = vpop.f32.mrf.mxu1  ;;  %v620_v30 = vadd.f32 %v619_v28, %v519_v27  ;;  %v773_v28 = vld [vmem:[#allocation10 + $0x18] sm:$0xff] }
 0x160   :  { %v560_v26 = vadd.f32 %v559_v25, %v540_v23  ;;  %v774_v23 = vld [vmem:[#allocation10 + $0x20] sm:$0xff] }
 0x161   :  { %817 = vmatpush.msra.mxu0 %v774_v23 }
 0x163   :  { %v579_v24 = vpop.f32.mrf.mxu2  ;;  %818 = vmatpush.msra.mxu0 %v773_v28 }
 0x164   :  { %v599_v14 = vpop.f32.mrf.mxu3  ;;  %v580_v29 = vadd.f32 %v579_v24, %v560_v26  ;;  %v794_v24 = vld [vmem:[#allocation10 + $0xc0] sm:$0xff] }
 0x165   :  { %833 = vmatpush.msra.mxu1 %v794_v24 }
 0x166   :  { %v1286_v31 = vadd.f32 %v599_v14, %v580_v29  ;;  %v793_v14 = vld [vmem:[#allocation10 + $0xb8] sm:$0xff] }
 0x167   :  { %v639_v33 = vpop.f32.mrf.mxu1  ;;  %834 = vmatpush.msra.mxu1 %v793_v14 }
 0x168   :  { %v1289_v32 = vmul.f32 0.70710677, %v1286_v31  ;;  %v640_v38 = vadd.f32 %v639_v33, %v620_v30  ;;  %v772_v30 = vld [vmem:[#allocation10 + $0x10] sm:$0xff]  ;;  %v682_v16 = vmul.f32 0.5, %v1286_v31 }
 0x169   :  { %v792_v33 = vld [vmem:[#allocation10 + $0xb0] sm:$0xff]  ;;  %819 = vmatpush.msra.mxu0 %v772_v30 }
 0x16a   :  { %v686_v22 = vmul.f32 %v1289_v32, %v1289_v32  ;;  %835 = vmatpush.msra.mxu1 %v792_v33  ;;  %v888_v31 = vld [vmem:[%s1340_s6] ss:$0 sm:$0xff] }
 0x16b   :  { %v659_v36 = vpop.f32.mrf.mxu2  ;;  %820 = vmatpush.msra.mxu0 %v771_v20 }
 0x16c   :  { %v1293_v42 = vmin.f32 %v686_v22, 16.0  ;;  %v660_v43 = vadd.f32 %v659_v36, %v640_v38  ;;  %v679_v46 = vpop.f32.mrf.mxu3  ;;  %v791_v38 = vld [vmem:[#allocation10 + $0xa8] sm:$0xff] }
 0x16d   :  { %836 = vmatpush.msra.mxu1 %v791_v38 }
 0x16e   :  { %v688_v47 = vmul.f32 2.1237322e-06, %v1293_v42  ;;  %v699_v48 = vmul.f32 3.8918573e-05, %v1293_v42  ;;  %v1297_v49 = vadd.f32 %v679_v46, %v660_v43  ;;  %v770_v43 = vld [vmem:[#allocation10] sm:$0xff] }
 0x16f   :  { %v790_v46 = vld [vmem:[#allocation10 + $0xa0] sm:$0xff]  ;;  %821 = vmatpush.msra.mxu0 %v770_v43 }
 0x170   :  { %v689_v51 = vadd.f32 0.00028619796, %v688_v47  ;;  %v700_v54 = vadd.f32 0.001143296, %v699_v48  ;;  %v1300_v52 = vmul.f32 0.70710677, %v1297_v49  ;;  %837 = vmatpush.msra.mxu1 %v790_v46 }
 0x171   :  { %v789_v48 = vld [vmem:[#allocation10 + $0x98] sm:$0xff] }
 0x172   :  { %v690_v56 = vmul.f32 %v689_v51, %v1293_v42  ;;  %v701_v55 = vmul.f32 %v700_v54, %v1293_v42  ;;  %v726_v37 = vmul.f32 %v1300_v52, %v1300_v52  ;;  %838 = vmatpush.msra.mxu1 %v789_v48 }
 0x174   :  { %v702_v58 = vadd.f32 0.014752088, %v701_v55  ;;  %v691_v59 = vadd.f32 0.0036580483, %v690_v56  ;;  %v1306_v60 = vmin.f32 %v726_v37, 16.0  ;;  %v787_v37 = vld [vmem:[#allocation10 + $0x88] sm:$0xff]  ;;  %839 = vmatpush.msra.mxu1 %v788_v34 }
 0x176   :  { %v703_v63 = vmul.f32 %v702_v58, %v1293_v42  ;;  %v728_v0 = vmul.f32 2.1237322e-06, %v1306_v60  ;;  %v739_v1 = vmul.f32 3.8918573e-05, %v1306_v60  ;;  %v692_v35 = vmul.f32 %v691_v59, %v1293_v42  ;;  %840 = vmatpush.msra.mxu1 %v787_v37 }
 0x178   :  { %v704_v4 = vadd.f32 0.112945676, %v703_v63  ;;  %v729_v6 = vadd.f32 0.00028619796, %v728_v0  ;;  %v740_v7 = vadd.f32 0.001143296, %v739_v1  ;;  %841 = vmatpush.msra.mxu1 %v786_v61 }
 0x179   :  { %v693_v18 = vadd.f32 0.05243302, %v692_v35 }
 0x17a   :  { %v705_v12 = vmul.f32 %v704_v4, %v1293_v42  ;;  %v730_v9 = vmul.f32 %v729_v6, %v1306_v60  ;;  %v741_v15 = vmul.f32 %v740_v7, %v1306_v60 }
 0x17b   :  { %v694_v26 = vmul.f32 %v693_v18, %v1293_v42 }
 0x17c   :  { %v706_v17 = vadd.f32 0.4994258, %v705_v12  ;;  %v742_v44 = vadd.f32 0.014752088, %v741_v15  ;;  %v731_v10 = vadd.f32 0.0036580483, %v730_v9 }
 0x17d   :  { %v695_v22 = vadd.f32 0.18741608, %v694_v26 }
 0x17e   :  { %v707_v21 = vmul.f32 %v706_v17, %v1293_v42  ;;  %v743_v19 = vmul.f32 %v742_v44, %v1306_v60  ;;  %v732_v29 = vmul.f32 %v731_v10, %v1306_v60  ;;  %v683_v10 = vmul.f32 0.5, %v1297_v49 }
 0x17f   :  { %v696_v51 = vmul.f32 %v695_v22, %v1293_v42 }
 0x180   :  { %v708_v25 = vadd.f32 1.0, %v707_v21  ;;  %v744_v27 = vadd.f32 0.112945676, %v743_v19  ;;  %v733_v41 = vadd.f32 0.05243302, %v732_v29 }
 0x181   :  { %v697_v57 = vadd.f32 1.1283791, %v696_v51 }
 0x182   :  { %897 = vrcp.f32 %v708_v25  ;;  %v745_v36 = vmul.f32 %v744_v27, %v1306_v60  ;;  %v734_v56 = vmul.f32 %v733_v41, %v1306_v60  ;;  %v720_v39 = vand.u32 2147483648, %v708_v25 }
 0x183   :  { %v718_v59 = vand.u32 2147483647, %v708_v25  ;;  %vm714_vm2 = vweird.f32 %v708_v25  ;;  %v698_v1 = vmul.f32 %v697_v57, %v1289_v32 }
 0x184   :  { %v746_v40 = vadd.f32 0.4994258, %v745_v36  ;;  %v735_v62 = vadd.f32 0.18741608, %v734_v56  ;;  %v721_v42 = vor.u32 1.1754944e-38, %v720_v39 }
 0x185   :  { %vm719_vm4 = vcmp.eq.f32.partialorder %v718_v59, 8.507059e+37 }
 0x186   :  { %v747_v47 = vmul.f32 %v746_v40, %v1306_v60  ;;  %v736_v4 = vmul.f32 %v735_v62, %v1306_v60 }
 0x188   :  { %v898_v50 = vpop.eup %897  ;;  %v748_v53 = vadd.f32 1.0, %v747_v47  ;;  %v737_v12 = vadd.f32 1.1283791, %v736_v4 }
 0x189   :  { %v710_v54 = vmul.f32 %v898_v50, %v708_v25  ;;  %vm715_vm1 = vweird.f32 %v898_v50 }
 0x18a   :  { %899 = vrcp.f32 %v748_v53  ;;  %vm716_vm3 = vmor %vm714_vm2, %vm715_vm1  ;;  %v760_v11 = vand.u32 2147483648, %v748_v53  ;;  %v758_v15 = vand.u32 2147483647, %v748_v53  ;;  %vm754_vm6 = vweird.f32 %v748_v53 }
 0x18b   :  { %v711_v55 = vsub.f32 1.0, %v710_v54  ;;  %v738_v44 = vmul.f32 %v737_v12, %v1300_v52 }
 0x18c   :  { %v761_v18 = vor.u32 1.1754944e-38, %v760_v11  ;;  %vm759_vm8 = vcmp.eq.f32.partialorder %v758_v15, 8.507059e+37 }
 0x18d   :  { %v712_v58 = vmul.f32 %v898_v50, %v711_v55 }
 0x18f   :  { %v713_v63 = vadd.f32 %v898_v50, %v712_v58 }
 0x190   :  { %v900_v0 = vpop.eup %899 }
 0x191   :  { %v717_v2 = vsel %vm716_vm3, %v898_v50, %v713_v63  ;;  %v750_v35 = vmul.f32 %v900_v0, %v748_v53  ;;  %vm755_vm5 = vweird.f32 %v900_v0 }
 0x192   :  { %v722_v3 = vsel %vm719_vm4, %v721_v42, %v717_v2  ;;  %vm756_vm7 = vmor %vm754_vm6, %vm755_vm5 }
 0x193   :  { %v723_v6 = vmul.f32 %v722_v3, %v698_v1  ;;  %v751_v7 = vsub.f32 1.0, %v750_v35 }
 0x195   :  { %v874_v8 = vclamps-f32 %v723_v6, 1.0  ;;  %v752_v9 = vmul.f32 %v900_v0, %v751_v7 }
 0x197   :  { %v766_v13 = vadd.f32 1.0, %v874_v8  ;;  %v753_v17 = vadd.f32 %v900_v0, %v752_v9 }
 0x199   :  { %v768_v32 = vmul.f32 %v766_v13, %v682_v16  ;;  %v757_v60 = vsel %vm756_vm7, %v900_v0, %v753_v17 }
 0x19a   :  { %v762_v5 = vsel %vm759_vm8, %v761_v18, %v757_v60 }
 0x19b   :  { %822 = vmatmul.f32.vlgmr.msra.gmra.mxu0 %v768_v32  ;;  %v763_v45 = vmul.f32 %v762_v5, %v738_v44 }
 0x19d   :  { %v875_v21 = vclamps-f32 %v763_v45, 1.0 }
 0x19f   :  { %v767_v19 = vadd.f32 1.0, %v875_v21 }
 0x1a1   :  { %v769_v23 = vmul.f32 %v767_v19, %v683_v10 }
 0x1a3   :  { %842 = vmatmul.f32.vlgmr.msra.gmra.mxu1 %v769_v23 }
 0x218   :  { %v823_v24 = vpop.f32.mrf.mxu0 }
 0x219   :  { %v824_v52 = vadd.f32 %v888_v31, %v823_v24 }
 0x220   :  { %v843_v25 = vpop.f32.mrf.mxu1 }
 0x221   :  { %v844_v26 = vadd.f32 %v843_v25, %v824_v52 }
 0x223   :  { %846 = vst [vmem:[#allocation11] sm:$0xff] %v844_v26 }
 0x224   :  { %857 = dma.vmem_to_hbm [thread:$0]  %s853_s8, 128, %s855_s11, [#allocation4]  }
 0x225   :  { %1051 = dma.done.wait [#allocation4], 128  }
 0x226   :  { %1052 = vsyncadd [#allocation4], 4294967168 }
 0x227   :  { %862 = vsyncpa [#allocation3], 1 }
 0x228   :  { %863 = vsyncpa [#allocation6], 1 }
 0x229   :  { %864 = vsyncpa [#allocation9], 1 }
 0x22a   :  { %865 = vsyncpa [#allocation4], 1 }

</bundles_post_ra>
